<compile_context>
chip_gen: v6e
topology: v6e:2x2x1
jax: 0.10.0
libtpu: 0.0.40
codegen_flags: <defaults>
</compile_context>

<pallas_src>
import functools
import math

import jax
import jax.numpy as jnp
from jax import lax
from jax.experimental import pallas as pl
from jax.experimental.pallas import tpu as pltpu

THRESHOLD = 1.0
BN_EPS = 1e-5
ALPHA_LO = math.exp(-1.0 / 5.0)
ALPHA_HI = math.exp(-1.0 / 25.0)
_VMEM_LIMIT = 48 * 1024 * 1024  # below v7x's 64 MiB physical VMEM per TensorCore


def _round_up(n, m):
    return ((n + m - 1) // m) * m


# --------------------------------------------------------------------------- #
# Kernel 1: streaming BatchNorm statistics of Wx (Wx never round-trips HBM).   #
# --------------------------------------------------------------------------- #
def _bn_stats_kernel(x_ref, w_ref, mu_ref, var_ref, sum_sc, sq_sc, *, n_rows):
    c = pl.program_id(0)

    @pl.when(c == 0)
    def _():
        sum_sc[...] = jnp.zeros_like(sum_sc)
        sq_sc[...] = jnp.zeros_like(sq_sc)

    tc, bp, d = x_ref.shape
    wx = jnp.dot(x_ref[...].reshape(tc * bp, d), w_ref[...],
                 preferred_element_type=jnp.float32)          # (tc*bp, Hp) on MXU
    sum_sc[...] += jnp.sum(wx, axis=0, keepdims=True)
    sq_sc[...] += jnp.sum(wx * wx, axis=0, keepdims=True)

    @pl.when(c == pl.num_programs(0) - 1)
    def _():
        inv_n = jnp.float32(1.0 / n_rows)
        mu = sum_sc[...] * inv_n
        var = jnp.maximum(sq_sc[...] * inv_n - mu * mu, 0.0)   # biased variance
        mu_ref[...] = mu
        var_ref[...] = var


# --------------------------------------------------------------------------- #
# Kernel 2: fused matmul + BN-affine + LIF recurrence over a time chunk.       #
# --------------------------------------------------------------------------- #
def _lif_fused_kernel(x_ref, w_ref, a_ref, b_ref, c_ref, u0_ref, s0_ref,
                      out_ref, ut_sc, st_sc, wxn_sc, *, threshold):
    ci = pl.program_id(1)                 # time-chunk index (sequential / "arbitrary")

    @pl.when(ci == 0)
    def _():                              # initial state only at the first chunk
        ut_sc[...] = u0_ref[...]
        st_sc[...] = s0_ref[...]

    tc, tb, d = x_ref.shape
    hp = out_ref.shape[-1]

    # Whole-chunk matmul on the MXU, then one chunk-wide FMA applying
    # (1 - alpha) * (BatchNorm affine):  wxn = wx * b + c.
    wx = jnp.dot(x_ref[...].reshape(tc * tb, d), w_ref[...],
                 preferred_element_type=jnp.float32)
    wxn_sc[...] = (wx * b_ref[...] + c_ref[...]).reshape(tc, tb, hp)

    # Hoist the per-timestep invariant broadcast out of the time loop.
    alpha = jnp.broadcast_to(a_ref[...], (tb, hp))

    def step(tau, carry):
        ut = alpha * (ut_sc[...] - st_sc[...]) + wxn_sc[tau]
        st = (ut - threshold > 0.0).astype(jnp.float32)       # boxcar spike (fwd)
        ut_sc[...] = ut
        st_sc[...] = st
        out_ref[tau] = st
        return carry

    lax.fori_loop(0, tc, step, 0, unroll=(tc <= 16))


# --------------------------------------------------------------------------- #
# Wrapper                                                                       #
# --------------------------------------------------------------------------- #
def lif_forward(x, w, alpha, gamma, beta, u0, s0, *, threshold=THRESHOLD,
                time_chunk=None):
    """LIFLayer.forward (train-mode batchnorm, dropout p=0, unidirectional).

    x: (B, T, D); w: (H, D) nn.Linear weight; alpha/gamma/beta: (H,);
    u0, s0: (B, H) initial membrane / spike state (torch.rand in the reference,
    passed explicitly here for determinism).  Returns spikes (B, T, H) float32.
    """
    B, T, D = x.shape
    H = w.shape[0]

    Bp = _round_up(max(B, 8), 8)           # sublane-dense rows
    Hp = _round_up(max(H, 128), 128)       # lane-dense features

    # Time-chunk size from a conservative VMEM budget (v7x: 64 MiB/TC).
    if time_chunk is None:
        per_t = 4 * Bp * (3 * Hp + 2 * D)  # wxn scratch + 2x out bufs + 2x x bufs
        time_chunk = max(1, min(256, (24 * 1024 * 1024) // per_t))
    n_chunks = max(1, -(-T // time_chunk))
    tc = -(-T // n_chunks)                 # minimize time padding
    Tp = n_chunks * tc

    # Batch tile: split across the two TensorCores (v7x megacore) when possible.
    tb = Bp // 2 if (Bp >= 16 and Bp % 16 == 0) else Bp

    # --- pad + lay out time-major ------------------------------------------ #
    x_tm = jnp.transpose(x.astype(jnp.float32), (1, 0, 2))        # (T, B, D)
    x_tm = jnp.pad(x_tm, ((0, Tp - T), (0, Bp - B), (0, 0)))
    w_p = jnp.pad(w.astype(jnp.float32).T, ((0, 0), (0, Hp - H)))  # (D, Hp)

    def _pad_vec(v, fill):
        return jnp.pad(v.astype(jnp.float32), (0, Hp - H),
                       constant_values=fill).reshape(1, Hp)

    gamma_p = _pad_vec(gamma, 1.0)
    beta_p = _pad_vec(beta, 0.0)
    alpha_p = _pad_vec(alpha, ALPHA_LO)
    u0_p = jnp.pad(u0.astype(jnp.float32), ((0, Bp - B), (0, Hp - H)))
    s0_p = jnp.pad(s0.astype(jnp.float32), ((0, Bp - B), (0, Hp - H)))

    # --- pass 1: BN statistics of Wx (chunked, pipelined) ------------------- #
    mu, var = pl.pallas_call(
        functools.partial(_bn_stats_kernel, n_rows=float(B * T)),
        out_shape=(jax.ShapeDtypeStruct((1, Hp), jnp.float32),
                   jax.ShapeDtypeStruct((1, Hp), jnp.float32)),
        grid=(n_chunks,),
        in_specs=[
            pl.BlockSpec((tc, Bp, D), lambda c: (c, 0, 0)),
            pl.BlockSpec((D, Hp), lambda c: (0, 0)),
        ],
        out_specs=(pl.BlockSpec((1, Hp), lambda c: (0, 0)),
                   pl.BlockSpec((1, Hp), lambda c: (0, 0))),
        scratch_shapes=[pltpu.VMEM((1, Hp), jnp.float32),
                        pltpu.VMEM((1, Hp), jnp.float32)],
        compiler_params=pltpu.CompilerParams(
            dimension_semantics=("arbitrary",),
            vmem_limit_bytes=_VMEM_LIMIT),
    )(x_tm, w_p)

    # Fold BatchNorm affine and (1 - alpha) into two (1, Hp) vectors (tiny XLA ops).
    inv_std = lax.rsqrt(var + BN_EPS)
    scale = gamma_p * inv_std
    shift = beta_p - mu * scale
    alpha_c = jnp.clip(alpha_p, ALPHA_LO, ALPHA_HI)
    b_vec = (1.0 - alpha_c) * scale
    c_vec = (1.0 - alpha_c) * shift

    # --- pass 2: fused matmul + normalization + LIF recurrence -------------- #
    s_tm = pl.pallas_call(
        functools.partial(_lif_fused_kernel, threshold=float(threshold)),
        out_shape=jax.ShapeDtypeStruct((Tp, Bp, Hp), jnp.float32),
        grid=(Bp // tb, n_chunks),
        in_specs=[
            pl.BlockSpec((tc, tb, D), lambda bi, ci: (ci, bi, 0)),  # x chunk
            pl.BlockSpec((D, Hp), lambda bi, ci: (0, 0)),           # W^T (resident)
            pl.BlockSpec((1, Hp), lambda bi, ci: (0, 0)),           # alpha
            pl.BlockSpec((1, Hp), lambda bi, ci: (0, 0)),           # (1-alpha)*scale
            pl.BlockSpec((1, Hp), lambda bi, ci: (0, 0)),           # (1-alpha)*shift
            pl.BlockSpec((tb, Hp), lambda bi, ci: (bi, 0)),         # u0
            pl.BlockSpec((tb, Hp), lambda bi, ci: (bi, 0)),         # s0
        ],
        out_specs=pl.BlockSpec((tc, tb, Hp), lambda bi, ci: (ci, bi, 0)),
        scratch_shapes=[pltpu.VMEM((tb, Hp), jnp.float32),          # ut state
                        pltpu.VMEM((tb, Hp), jnp.float32),          # st state
                        pltpu.VMEM((tc, tb, Hp), jnp.float32)],     # normalized Wx chunk
        compiler_params=pltpu.CompilerParams(
            dimension_semantics=("parallel", "arbitrary"),
            vmem_limit_bytes=_VMEM_LIMIT),
    )(x_tm, w_p, alpha_c, b_vec, c_vec, u0_p, s0_p)

    # dropout p=0.0 -> identity; bidirectional=False -> no flip/concat.
    return jnp.transpose(s_tm[:T, :B, :H], (1, 0, 2))               # (B, T, H)


# --------------------------------------------------------------------------- #
# Pure-JAX reference (mirrors the PyTorch module) for a sanity check.           #
# --------------------------------------------------------------------------- #
def _lif_reference(x, w, alpha, gamma, beta, u0, s0, threshold=THRESHOLD):
    B, T, _ = x.shape
    wx = jnp.einsum("btd,hd->bth", x, w, precision=lax.Precision.HIGHEST)
    flat = wx.reshape(B * T, -1)
    mu = flat.mean(axis=0)
    var = ((flat - mu) ** 2).mean(axis=0)
    wx = (wx - mu) * lax.rsqrt(var + BN_EPS) * gamma + beta
    a = jnp.clip(alpha, ALPHA_LO, ALPHA_HI)

    def step(carry, wx_t):
        ut, st = carry
        ut = a * (ut - st) + (1.0 - a) * wx_t
        st = (ut - threshold > 0.0).astype(jnp.float32)
        return (ut, st), st

    _, s = lax.scan(step, (u0, s0), jnp.transpose(wx, (1, 0, 2)))
    return jnp.transpose(s, (1, 0, 2))


if __name__ == "__main__":
    key = jax.random.PRNGKey(0)
    B, T, D, H = 2, 8, 16, 32   # batch, seq, input_size, hidden_size
    ks = jax.random.split(key, 5)

    x = jax.random.normal(ks[0], (B, T, D), jnp.float32)
    bound = 1.0 / math.sqrt(D)
    w = jax.random.uniform(ks[1], (H, D), jnp.float32, -bound, bound)  # nn.Linear weight
    alpha = jax.random.uniform(ks[2], (H,), jnp.float32, ALPHA_LO, ALPHA_HI)
    gamma = jnp.ones((H,), jnp.float32)    # BatchNorm1d affine defaults
    beta = jnp.zeros((H,), jnp.float32)
    # _lif_cell initial state is torch.rand(B, H) in the reference; deterministic here.
    u0 = jax.random.uniform(ks[3], (B, H), jnp.float32)
    s0 = jax.random.uniform(ks[4], (B, H), jnp.float32)

    s = lif_forward(x, w, alpha, gamma, beta, u0, s0)
    jax.block_until_ready(s)
    assert s.shape == (B, T, H) and s.dtype == jnp.float32

    s_ref = _lif_reference(x, w, alpha, gamma, beta, u0, s0)
    # Spikes are a hard threshold; tolerate rare boundary flips from summation-order
    # / MXU-pass differences in the f32 matmul and BN statistics.
    mismatch_frac = float(jnp.mean(jnp.abs(s - s_ref)))
    assert mismatch_frac < 0.05, f"spike mismatch fraction {mismatch_frac}"

    print("KERNEL_OK")
</pallas_src>

<mosaic_0001>
module attributes {stable_mosaic.version = 11 : i64} {
  func.func @_bn_stats_kernel(%arg0: i32, %arg1: memref<8x8x16xf32, #tpu.memory_space<vmem>>, %arg2: memref<16x128xf32, #tpu.memory_space<vmem>>, %arg3: memref<1x128xf32, #tpu.memory_space<vmem>>, %arg4: memref<1x128xf32, #tpu.memory_space<vmem>>, %arg5: memref<1x128xf32, #tpu.memory_space<vmem>>, %arg6: memref<1x128xf32, #tpu.memory_space<vmem>>) attributes {dimension_semantics = [#tpu.dimension_semantics<arbitrary>], iteration_bounds = array<i64: 1>, scalar_prefetch = 0 : i64, scratch_operands = 2 : i64, tpu.core_type = #tpu.core_type<tc>, window_params = [{transform_indices = @transform_0, window_bounds = array<i64: 8, 8, 16>}, {pipeline_mode = #tpu.pipeline_mode<synchronous>, transform_indices = @transform_1, window_bounds = array<i64: 16, 128>}, {pipeline_mode = #tpu.pipeline_mode<synchronous>, transform_indices = @transform_2, window_bounds = array<i64: 1, 128>}, {pipeline_mode = #tpu.pipeline_mode<synchronous>, transform_indices = @transform_3, window_bounds = array<i64: 1, 128>}]} {
    %c0_i32 = arith.constant 0 : i32
    %0 = arith.cmpi eq, %arg0, %c0_i32 : i32
    %1 = arith.extui %0 : i1 to i32
    %c0_i32_0 = arith.constant 0 : i32
    %2 = arith.cmpi ne, %1, %c0_i32_0 : i32
    scf.if %2 {
      %cst_17 = arith.constant 0.000000e+00 : f32
      %21 = vector.broadcast %cst_17 : f32 to vector<1x128xf32>
      %c0_18 = arith.constant 0 : index
      %c0_19 = arith.constant 0 : index
      %22 = vector.load %arg5[%c0_18, %c0_19] : memref<1x128xf32, #tpu.memory_space<vmem>>, vector<1x128xf32>
      tpu.vector_store %arg5[%c0_18, %c0_19], %21 {strides = array<i32>} : memref<1x128xf32, #tpu.memory_space<vmem>>, vector<1x128xf32>,
      %cst_20 = arith.constant 0.000000e+00 : f32
      %23 = vector.broadcast %cst_20 : f32 to vector<1x128xf32>
      %c0_21 = arith.constant 0 : index
      %c0_22 = arith.constant 0 : index
      %24 = vector.load %arg6[%c0_21, %c0_22] : memref<1x128xf32, #tpu.memory_space<vmem>>, vector<1x128xf32>
      tpu.vector_store %arg6[%c0_21, %c0_22], %23 {strides = array<i32>} : memref<1x128xf32, #tpu.memory_space<vmem>>, vector<1x128xf32>,
    } else {
    }
    %c0 = arith.constant 0 : index
    %c0_1 = arith.constant 0 : index
    %c0_2 = arith.constant 0 : index
    %3 = vector.load %arg1[%c0, %c0_1, %c0_2] : memref<8x8x16xf32, #tpu.memory_space<vmem>>, vector<8x8x16xf32>
    %4 = vector.shape_cast %3 : vector<8x8x16xf32> to vector<64x16xf32>
    %c0_3 = arith.constant 0 : index
    %c0_4 = arith.constant 0 : index
    %5 = vector.load %arg2[%c0_3, %c0_4] : memref<16x128xf32, #tpu.memory_space<vmem>>, vector<16x128xf32>
    %cst = arith.constant dense<0.000000e+00> : vector<64x128xf32>
    %6 = tpu.matmul %4, %5, %cst {dimension_numbers = #tpu.dot_dimension_numbers<[1], [0], [0], [1], [0, 0, 1, 1], [], []>} : vector<64x16xf32>, vector<16x128xf32>, vector<64x128xf32> -> vector<64x128xf32>
    %c0_5 = arith.constant 0 : index
    %c0_6 = arith.constant 0 : index
    %7 = vector.load %arg5[%c0_5, %c0_6] : memref<1x128xf32, #tpu.memory_space<vmem>>, vector<1x128xf32>
    %cst_7 = arith.constant dense<0.000000e+00> : vector<128xf32>
    %8 = vector.multi_reduction <add>, %6, %cst_7 [0] : vector<64x128xf32> to vector<128xf32>
    %9 = vector.shape_cast %8 : vector<128xf32> to vector<1x128xf32>
    %10 = arith.addf %7, %9 : vector<1x128xf32>
    %c0_8 = arith.constant 0 : index
    %c0_9 = arith.constant 0 : index
    %11 = vector.load %arg5[%c0_8, %c0_9] : memref<1x128xf32, #tpu.memory_space<vmem>>, vector<1x128xf32>
    tpu.vector_store %arg5[%c0_8, %c0_9], %10 {strides = array<i32>} : memref<1x128xf32, #tpu.memory_space<vmem>>, vector<1x128xf32>,
    %c0_10 = arith.constant 0 : index
    %c0_11 = arith.constant 0 : index
    %12 = vector.load %arg6[%c0_10, %c0_11] : memref<1x128xf32, #tpu.memory_space<vmem>>, vector<1x128xf32>
    %13 = arith.mulf %6, %6 : vector<64x128xf32>
    %cst_12 = arith.constant dense<0.000000e+00> : vector<128xf32>
    %14 = vector.multi_reduction <add>, %13, %cst_12 [0] : vector<64x128xf32> to vector<128xf32>
    %15 = vector.shape_cast %14 : vector<128xf32> to vector<1x128xf32>
    %16 = arith.addf %12, %15 : vector<1x128xf32>
    %c0_13 = arith.constant 0 : index
    %c0_14 = arith.constant 0 : index
    %17 = vector.load %arg6[%c0_13, %c0_14] : memref<1x128xf32, #tpu.memory_space<vmem>>, vector<1x128xf32>
    tpu.vector_store %arg6[%c0_13, %c0_14], %16 {strides = array<i32>} : memref<1x128xf32, #tpu.memory_space<vmem>>, vector<1x128xf32>,
    %c0_i32_15 = arith.constant 0 : i32
    %18 = arith.cmpi eq, %arg0, %c0_i32_15 : i32
    %19 = arith.extui %18 : i1 to i32
    %c0_i32_16 = arith.constant 0 : i32
    %20 = arith.cmpi ne, %19, %c0_i32_16 : i32
    scf.if %20 {
      %c0_17 = arith.constant 0 : index
      %c0_18 = arith.constant 0 : index
      %21 = vector.load %arg5[%c0_17, %c0_18] : memref<1x128xf32, #tpu.memory_space<vmem>>, vector<1x128xf32>
      %cst_19 = arith.constant 6.250000e-02 : f32
      %22 = vector.broadcast %cst_19 : f32 to vector<1x128xf32>
      %23 = arith.mulf %21, %22 : vector<1x128xf32>
      %c0_20 = arith.constant 0 : index
      %c0_21 = arith.constant 0 : index
      %24 = vector.load %arg6[%c0_20, %c0_21] : memref<1x128xf32, #tpu.memory_space<vmem>>, vector<1x128xf32>
      %cst_22 = arith.constant 6.250000e-02 : f32
      %25 = vector.broadcast %cst_22 : f32 to vector<1x128xf32>
      %26 = arith.mulf %24, %25 : vector<1x128xf32>
      %27 = arith.mulf %23, %23 : vector<1x128xf32>
      %28 = arith.subf %26, %27 : vector<1x128xf32>
      %cst_23 = arith.constant 0.000000e+00 : f32
      %29 = vector.broadcast %cst_23 : f32 to vector<1x128xf32>
      %30 = arith.maximumf %28, %29 : vector<1x128xf32>
      %c0_24 = arith.constant 0 : index
      %c0_25 = arith.constant 0 : index
      %31 = vector.load %arg3[%c0_24, %c0_25] : memref<1x128xf32, #tpu.memory_space<vmem>>, vector<1x128xf32>
      tpu.vector_store %arg3[%c0_24, %c0_25], %23 {strides = array<i32>} : memref<1x128xf32, #tpu.memory_space<vmem>>, vector<1x128xf32>,
      %c0_26 = arith.constant 0 : index
      %c0_27 = arith.constant 0 : index
      %32 = vector.load %arg4[%c0_26, %c0_27] : memref<1x128xf32, #tpu.memory_space<vmem>>, vector<1x128xf32>
      tpu.vector_store %arg4[%c0_26, %c0_27], %30 {strides = array<i32>} : memref<1x128xf32, #tpu.memory_space<vmem>>, vector<1x128xf32>,
    } else {
    }
    return
  }
  func.func @transform_0(%arg0: i32) -> (i32, i32, i32) {
    %c0_i32 = arith.constant 0 : i32
    %c0_i32_0 = arith.constant 0 : i32
    %c0_i32_1 = arith.constant 0 : i32
    return %arg0, %c0_i32, %c0_i32_0 : i32, i32, i32
  }
  func.func @transform_1(%arg0: i32) -> (i32, i32) {
    %c0_i32 = arith.constant 0 : i32
    %c0_i32_0 = arith.constant 0 : i32
    %c0_i32_1 = arith.constant 0 : i32
    return %c0_i32, %c0_i32_0 : i32, i32
  }
  func.func @transform_2(%arg0: i32) -> (i32, i32) {
    %c0_i32 = arith.constant 0 : i32
    %c0_i32_0 = arith.constant 0 : i32
    %c0_i32_1 = arith.constant 0 : i32
    return %c0_i32, %c0_i32_0 : i32, i32
  }
  func.func @transform_3(%arg0: i32) -> (i32, i32) {
    %c0_i32 = arith.constant 0 : i32
    %c0_i32_0 = arith.constant 0 : i32
    %c0_i32_1 = arith.constant 0 : i32
    return %c0_i32, %c0_i32_0 : i32, i32
  }
}

</mosaic_0001>

<bundles_post_ra>
// kernel: tpu_custom_call.1
= control target key start
LH: loop header
LB: loop body
LE: loop exit
PB: predicated region body
PF: predicated region fallthrough
CT: control target
= control target key end

     0   :  { %9 = vsyncpa [#allocation5], 0  ;;  %s451_s0 = inlined_call_operand.hbm [shape: f32[8,8,16], index: 0, kind: input, shape index: {}]   ;;  %s452_s1 = inlined_call_operand.hbm [shape: f32[16,128], index: 1, kind: input, shape index: {}]   ;;  %s453_s2 = inlined_call_operand.hbm [shape: f32[1,128], index: 2, kind: output, shape index: {0}]   ;;  %s454_s3 = inlined_call_operand.hbm [shape: f32[1,128], index: 3, kind: output, shape index: {1}]  }
   0x1   :  { %10 = vsyncpa [#allocation8], 0 }
   0x2   :  { %11 = vsyncpa [#allocation6], 0 }
   0x3   :  { %12 = vsyncpa [#allocation11], 0  ;;  %s404_s12 = smov [#allocation4]  }
   0x4   :  { %s18_s13 = sshll.u32 %s404_s12, 4  ;;  %s19_s13 = int_to_ptr.vmem [resolvable:$true] %s18_s13 }
   0x5   :  { %s324_s14 = scalar_lea.vmem %s19_s13, 1024  ;;  %p329_p1 = scmp.lt.s32.totalorder %s19_s13, %s19_s13 }
   0x6   :  { %p325_p0 = scmp.ne.s32.totalorder %s19_s13, %s324_s14  ;;  %p330_p2 = scmp.lt.s32.totalorder %s324_s14, %s324_s14 }
   0x8   :  { %p331_p3 = por %p330_p2, %p329_p1 }
   0xa   :  { %p332_p4 = pnand %p331_p3, %p325_p0 }
   0xc   :  { %335 = shalt.err (!%p332_p4)
}
   0xd   :  { %s405_s15 = smov 128   ;;  %s406_s16 = smov 8  }
   0xe   :  { %24 = dma.hbm_to_vmem [thread:$0]  %s451_s0, 1024, %s19_s13, [#allocation5], %s405_s15, %s405_s15, %s406_s16  }
   0xf   :  { %s407_s19 = smov [#allocation7]  }
  0x10   :  { %s30_s20 = sshll.u32 %s407_s19, 4  ;;  %s31_s20 = int_to_ptr.vmem [resolvable:$true] %s30_s20 }
  0x11   :  { %s344_s21 = scalar_lea.vmem %s31_s20, 256  ;;  %p349_p6 = scmp.lt.s32.totalorder %s31_s20, %s31_s20 }
  0x12   :  { %p345_p5 = scmp.ne.s32.totalorder %s31_s20, %s344_s21  ;;  %p350_p7 = scmp.lt.s32.totalorder %s344_s21, %s344_s21 }
  0x14   :  { %p351_p8 = por %p350_p7, %p349_p6 }
  0x16   :  { %p352_p9 = pnand %p351_p8, %p345_p5 }
  0x18   :  { %355 = shalt.err (!%p352_p9)
}
  0x19   :  { %36 = dma.hbm_to_vmem [thread:$0]  %s452_s1, 256, %s31_s20, [#allocation8], %s405_s15, %s405_s15, %s406_s16  }
  0x1a   :  { %396 = dma.done.wait [#allocation5], 1024  }
  0x1b   :  { %397 = vsyncadd [#allocation5], 4294966272 }
  0x1c   :  { %398 = dma.done.wait [#allocation8], 256  }
  0x1d   :  { %399 = vsyncadd [#allocation8], 4294967040  ;;  %vm59_vm0 = vcmask 130048   ;;  %v58_v0 = vld [vmem:[#allocation7 + $0x8] sm:$0xff]  ;;  %v57_v1 = vld [vmem:[#allocation7] sm:$0xff]  ;;  %v408_v10 = vmov 0.0  }
  0x1e   :  { %v49_v2 = vld [vmem:[#allocation4] sm:$0xff]  ;;  %289 = vmatprep.subr.mxu0 %v58_v0  ;;  %v50_v3 = vld [vmem:[#allocation4 + $0x8] sm:$0xff]  ;;  %305 = vmatprep.subr.mxu1 %v58_v0  ;;  %v51_v4 = vld [vmem:[#allocation4 + $0x10] sm:$0xff]  ;;  %47 = vst [vmem:[#allocation2] sm:$0x1] %v408_v10  ;;  %s409_s0 = smov [#allocation9]  }
  0x1f   :  { %293 = vmatprep.mubr.msk.f32.mxu0 %vm59_vm0, %v49_v2  ;;  %290 = vmatpush3.msra.mxu0 %v58_v0  ;;  %v53_v5 = vld [vmem:[#allocation4 + $0x20] sm:$0xff]  ;;  %v54_v6 = vld [vmem:[#allocation4 + $0x28] sm:$0xff]  ;;  %v55_v7 = vld [vmem:[#allocation4 + $0x30] sm:$0xff]  ;;  %48 = vst [vmem:[#allocation3] sm:$0x1] %v408_v10  ;;  %s247_s1 = sshll.u32 %s409_s0, 4  ;;  %s248_s1 = int_to_ptr.vmem [resolvable:$true] %s247_s1 }
  0x20   :  { %291 = vmatprep.subr.mxu0 %v57_v1  ;;  %307 = vmatpush3.msra.mxu1 %v58_v0  ;;  %v52_v8 = vld [vmem:[#allocation4 + $0x18] sm:$0xff]  ;;  %s410_s24 = smov [#allocation10]   ;;  %s356_s26 = scalar_lea.vmem %s248_s1, 16 }
  0x21   :  { %292 = vmatpush3.msra.mxu0 %v57_v1  ;;  %306 = vmatprep.subr.mxu1 %v57_v1  ;;  %v56_v9 = vld [vmem:[#allocation4 + $0x38] sm:$0xff]  ;;  %s257_s25 = sshll.u32 %s410_s24, 4  ;;  %p357_p10 = scmp.ne.s32.totalorder %s248_s1, %s356_s26  ;;  %s258_s25 = int_to_ptr.vmem [resolvable:$true] %s257_s25 }
  0x22   :  { %294 = vmatmul.mubr.msk.f32.vlgmr.msra.gmra.mxu0 %vm59_vm0, %v50_v3  ;;  %308 = vmatpush3.msra.mxu1 %v57_v1  ;;  %s360_s27 = scalar_lea.vmem %s248_s1, 32  ;;  %p361_p11 = scmp.lt.s32.totalorder %s248_s1, %s248_s1 }
  0x23   :  { %296 = vmatprep.mubr.msk.f32.mxu0 %vm59_vm0, %v51_v4  ;;  %299 = vmatprep.mubr.msk.f32.mxu1 %vm59_vm0, %v53_v5  ;;  %p362_p12 = scmp.lt.s32.totalorder %s360_s27, %s356_s26 }
  0x24   :  { %300 = vmatmul.mubr.msk.f32.vlgmr.msra.gmra.mxu1 %vm59_vm0, %v54_v6 }
  0x25   :  { %302 = vmatprep.mubr.msk.f32.mxu1 %vm59_vm0, %v55_v7  ;;  %v189_v50 = vld [vmem:[#allocation2] sm:$0x1]  ;;  %p363_p13 = por %p362_p12, %p361_p11 }
  0x26   :  { %297 = vmatmul.mubr.msk.f32.gmra.mxu0 %vm59_vm0, %v52_v8  ;;  %v205_v53 = vld [vmem:[#allocation3] sm:$0x1] }
  0x27   :  { %p364_p0 = pnand %p363_p13, %p357_p10 }
  0x28   :  { %303 = vmatmul.mubr.msk.f32.gmra.mxu1 %vm59_vm0, %v56_v9 }
  0xe2   :  { %v295_v11 = vpop.f32.mrf.mxu0 }
  0xe3   :  { %v207_v17 = vmul.f32 %v295_v11, %v295_v11 }
  0xe4   :  { %v150_v12 = vpop.f32.mrf.mxu0  ;;  %v301_v13 = vpop.f32.mrf.mxu1 }
  0xe5   :  { %v206_v14 = vmul.f32 %v150_v12, %v150_v12  ;;  %v190_v18 = vadd.f32 %v295_v11, %v150_v12  ;;  %v211_v31 = vmul.f32 %v301_v13, %v301_v13 }
  0xe6   :  { %v298_v15 = vpop.f32.mrf.mxu0  ;;  %v170_v16 = vpop.f32.mrf.mxu1 }
  0xe7   :  { %v214_v20 = vadd.f32 %v207_v17, %v206_v14  ;;  %v209_v24 = vmul.f32 %v298_v15, %v298_v15  ;;  %v210_v29 = vmul.f32 %v170_v16, %v170_v16 }
  0xe8   :  { %v160_v19 = vpop.f32.mrf.mxu0  ;;  %v304_v23 = vpop.f32.mrf.mxu1 }
  0xe9   :  { %v191_v21 = vadd.f32 %v190_v18, %v160_v19  ;;  %v208_v22 = vmul.f32 %v160_v19, %v160_v19  ;;  %v213_v37 = vmul.f32 %v304_v23, %v304_v23 }
  0xea   :  { %v180_v30 = vpop.f32.mrf.mxu1 }
  0xeb   :  { %v192_v25 = vadd.f32 %v298_v15, %v191_v21  ;;  %v215_v26 = vadd.f32 %v214_v20, %v208_v22  ;;  %v212_v35 = vmul.f32 %v180_v30, %v180_v30 }
  0xed   :  { %v216_v27 = vadd.f32 %v215_v26, %v209_v24  ;;  %v193_v28 = vadd.f32 %v192_v25, %v170_v16 }
  0xef   :  { %v217_v32 = vadd.f32 %v216_v27, %v210_v29  ;;  %v194_v33 = vadd.f32 %v301_v13, %v193_v28 }
  0xf1   :  { %v195_v34 = vadd.f32 %v194_v33, %v180_v30  ;;  %v218_v36 = vadd.f32 %v217_v32, %v211_v31 }
  0xf3   :  { %v196_v38 = vadd.f32 %v304_v23, %v195_v34  ;;  %v219_v39 = vadd.f32 %v218_v36, %v212_v35 }
  0xf5   :  { %v197_v40 = vrot.slane %v196_v38, 4  ;;  %v220_v41 = vadd.f32 %v219_v39, %v213_v37 }
  0xf7   :  { %v198_v42 = vadd.f32 %v197_v40, %v196_v38  ;;  %v221_v43 = vrot.slane %v220_v41, 4 }
  0xf9   :  { %v199_v44 = vrot.slane %v198_v42, 2  ;;  %v222_v45 = vadd.f32 %v221_v43, %v220_v41 }
  0xfb   :  { %v200_v46 = vadd.f32 %v199_v44, %v198_v42  ;;  %v223_v47 = vrot.slane %v222_v45, 2 }
  0xfd   :  { %v201_v48 = vrot.slane %v200_v46, 1  ;;  %v224_v49 = vadd.f32 %v223_v47, %v222_v45 }
  0xff   :  { %v202_v51 = vadd.f32 %v201_v48, %v200_v46  ;;  %v225_v52 = vrot.slane %v224_v49, 1 }
 0x101   :  { %v203_v54 = vadd.f32 %v202_v51, %v189_v50  ;;  %v226_v55 = vadd.f32 %v225_v52, %v224_v49 }
 0x103   :  { %204 = vst [vmem:[#allocation2] sm:$0x1] %v203_v54  ;;  %v227_v56 = vadd.f32 %v226_v55, %v205_v53 }
 0x105   :  { %228 = vst [vmem:[#allocation3] sm:$0x1] %v227_v56 }
 0x10a   :  { %v232_v57 = vld [vmem:[#allocation2] sm:$0x1] }
 0x10b   :  { %v233_v58 = vmul.f32 0.0625, %v232_v57 }
 0x10c   :  { %v234_v59 = vld [vmem:[#allocation3] sm:$0x1] }
 0x10d   :  { %v236_v60 = vmul.f32 %v233_v58, %v233_v58  ;;  %239 = vst [vmem:[#allocation9] sm:$0x1] %v233_v58  ;;  %v235_v61 = vmul.f32 0.0625, %v234_v59 }
 0x10e   :  { %367 = shalt.err (!%p364_p0)
}
 0x10f   :  { %250 = dma.vmem_to_hbm [thread:$0]  %s248_s1, 16, %s453_s2, [#allocation6]   ;;  %v237_v62 = vsub.f32 %v235_v61, %v236_v60 }
 0x110   :  { %s376_s30 = scalar_lea.vmem %s258_s25, 16  ;;  %s380_s4 = scalar_lea.vmem %s258_s25, 32 }
 0x111   :  { %v238_v63 = vmax.f32 %v237_v62, 0.0  ;;  %p377_p1 = scmp.ne.s32.totalorder %s258_s25, %s376_s30  ;;  %p381_p2 = scmp.lt.s32.totalorder %s258_s25, %s258_s25 }
 0x112   :  { %p382_p3 = scmp.lt.s32.totalorder %s380_s4, %s376_s30 }
 0x113   :  { %240 = vst [vmem:[#allocation10] sm:$0x1] %v238_v63 }
 0x114   :  { %p383_p4 = por %p382_p3, %p381_p2 }
 0x116   :  { %p384_p5 = pnand %p383_p4, %p377_p1 }
 0x118   :  { %387 = shalt.err (!%p384_p5)
}
 0x119   :  { %260 = dma.vmem_to_hbm [thread:$0]  %s258_s25, 16, %s454_s3, [#allocation11]  }
 0x11a   :  { %400 = dma.done.wait [#allocation6], 16  }
 0x11b   :  { %401 = vsyncadd [#allocation6], 4294967280 }
 0x11c   :  { %402 = dma.done.wait [#allocation11], 16  }
 0x11d   :  { %403 = vsyncadd [#allocation11], 4294967280 }
 0x11e   :  { %267 = vsyncpa [#allocation5], 1 }
 0x11f   :  { %268 = vsyncpa [#allocation8], 1 }
 0x120   :  { %269 = vsyncpa [#allocation6], 1 }
 0x121   :  { %270 = vsyncpa [#allocation11], 1 }

</bundles_post_ra>
